<compile_context>
chip_gen: v7x
topology: tpu7x:2x2x1
jax: 0.10.0
libtpu: 0.0.40
codegen_flags: <defaults>
</compile_context>

<pallas_src>
import functools

import jax
import jax.numpy as jnp
from jax.experimental import pallas as pl
from jax.experimental.pallas import tpu as pltpu


def _ttfs_kernel(x_ref, o_ref, *, step: int, step_tile: int):
    """TTFS encode one (row_tile, L) image tile into `step_tile` time bins.

    x_ref: (row_tile, L)             input pixels (native dtype, cast here)
    o_ref: (step_tile, row_tile, L)  f32 encoded spikes
    """
    step_f = float(step)
    xs = x_ref[...].astype(jnp.float32) * step_f            # (row_tile, L)
    sbase = pl.program_id(1) * step_tile                     # first absolute bin
    for t in range(step_tile):                               # static unroll
        i = (sbase + t).astype(jnp.float32)
        upper = step_f - i                                   # step - i
        lower = upper - 1.0                                  # step - i - 1
        val = 1.0 / (i + 1.0)                                # spike value
        mask = (xs <= upper) & (xs > lower)
        o_ref[t] = jnp.where(mask, val, jnp.float32(0.0))


def _lane_dense_shape(total, natural):
    """Pick a (rows, lanes) factorization of `total` with lanes % 128 == 0."""
    cap = min(total, 2048)
    best_big = None      # largest lane width that still leaves >= 8 rows
    best_any = None      # largest lane width that divides total at all
    lanes = 128
    while lanes <= cap:
        if total % lanes == 0:
            best_any = lanes
            if total // lanes >= 8:
                best_big = lanes
        lanes += 128
    best = best_big if best_big is not None else best_any
    if best is None:
        return natural   # not 128-divisible: fall back (masked stores, correct)
    return total // best, best


def ttfs_encode(inputs, step):
    """Pallas TTFS encoder. inputs: (b, c, h, w) -> (step, b, c, h, w) f32."""
    b, c, h, w = inputs.shape
    total = b * c * h * w
    R, L = _lane_dense_shape(total, (b * c, h * w))
    flat = inputs.reshape(R, L)                     # keep native dtype; cast in-kernel
    in_bytes = flat.dtype.itemsize

    # ---- per-generation VMEM budgeting (v5e/v6e: 128 MiB, v7x: 64 MiB) ----
    try:
        vmem_cap = int(getattr(pltpu.get_tpu_info(), "vmem_capacity_bytes",
                               64 * 1024 * 1024))
    except Exception:  # interpret mode / older runtimes
        vmem_cap = 64 * 1024 * 1024
    # double-buffered (input + output) working-set budget
    ws_budget = min(int(vmem_cap * 0.6), 64 * 1024 * 1024)

    def fit_rows(st):
        per_row = 2 * L * (in_bytes + st * 4)       # in + out blocks, double-buffered
        return max(1, ws_budget // per_row)

    # 1) pick step_tile so at least 8 rows (or the whole R) fit the budget
    min_rows = min(R, 8)
    step_tile = step
    while step_tile > 1 and fit_rows(step_tile) < min_rows:
        step_tile = pl.cdiv(step_tile, 2)

    # 2) largest sublane-aligned row tile within the budget
    row_tile = min(R, fit_rows(step_tile))
    if R >= 8:
        row_tile = max(8, (row_tile // 8) * 8)
    else:
        row_tile = R

    # 3) guarantee >= MIN_GRID grid points so the pipeline stays fed and both
    #    v7x TensorCores get work; split the step axis when rows are too few.
    MIN_GRID = 8
    n_row = pl.cdiv(R, row_tile)
    if n_row < MIN_GRID and R >= 8 * MIN_GRID:
        row_tile = max(8, (pl.cdiv(R, MIN_GRID) // 8) * 8)
        n_row = pl.cdiv(R, row_tile)
    if n_row * pl.cdiv(step, step_tile) < MIN_GRID and step_tile > 1:
        step_tile = max(1, min(step_tile,
                               pl.cdiv(step, pl.cdiv(MIN_GRID, n_row))))
    n_step = pl.cdiv(step, step_tile)
    grid = (n_row, n_step)   # step axis fastest -> input block re-used across it

    in_block = row_tile * L * in_bytes
    out_block = step_tile * row_tile * L * 4
    ws_actual = 2 * (in_block + out_block)
    vmem_limit = int(min(vmem_cap - (8 << 20),
                         max(ws_actual + (16 << 20), 32 << 20)))

    cost = pl.CostEstimate(
        flops=5 * step * total,
        transcendentals=0,
        bytes_accessed=n_step * total * in_bytes + step * total * 4)

    # TODO(synk): if the downstream SNN tolerates bf16 spikes, emitting the
    # output in bf16 would ~halve the write traffic (1/(i+1) becomes inexact).
    out = pl.pallas_call(
        functools.partial(_ttfs_kernel, step=step, step_tile=step_tile),
        out_shape=jax.ShapeDtypeStruct((step, R, L), jnp.float32),
        grid=grid,
        in_specs=[pl.BlockSpec((row_tile, L), lambda r, s: (r, 0))],
        out_specs=pl.BlockSpec((step_tile, row_tile, L),
                               lambda r, s: (s, r, 0)),
        compiler_params=pltpu.CompilerParams(
            dimension_semantics=("parallel", "parallel"),
            vmem_limit_bytes=vmem_limit),
        cost_estimate=cost,
    )(flat)
    return out.reshape(step, b, c, h, w)


class EncoderPallas:
    """JAX/Pallas port of BrainCog Encoder (encode_type='ttfs', defaults)."""

    def __init__(self, step, encode_type="ttfs",
                 temporal_flatten=False, layer_by_layer=False):
        assert encode_type == "ttfs", "only the default 'ttfs' path is implemented"
        self.step = step
        self.temporal_flatten = temporal_flatten
        self.layer_by_layer = layer_by_layer

    def __call__(self, inputs, deletion_prob=None, shift_var=None):
        if inputs.ndim == 5:
            # already temporal: (b, t, c, h, w) -> (t, b, c, h, w); pure layout
            outputs = jnp.transpose(inputs, (1, 0, 2, 3, 4))
        else:
            outputs = ttfs_encode(inputs, self.step)
        # TODO(synk): `delete` / `shift` rely on torch RNG side effects and
        # in-place mutation; not reproduced here.
        if self.layer_by_layer:
            t, b, c, h, w = outputs.shape
            outputs = outputs.reshape(t * b, c, h, w)
        return outputs


def _ttfs_reference(inputs, step):
    """Pure-JAX reference of the PyTorch ttfs loop, for verification."""
    x = inputs.astype(jnp.float32)
    outs = []
    for i in range(step):
        mask = (x * step <= step - i) & (x * step > step - i - 1)
        outs.append(jnp.where(mask, jnp.float32(1.0 / (i + 1)), 0.0))
    return jnp.stack(outs, axis=0)


if __name__ == "__main__":
    step = 8
    b, c, h, w = 2, 4, 16, 16
    key = jax.random.PRNGKey(0)
    x = jax.random.uniform(key, (b, c, h, w), dtype=jnp.float32)

    enc = EncoderPallas(step=step, encode_type="ttfs")
    out = enc(x)
    out = jax.block_until_ready(out)

    ref = _ttfs_reference(x, step)
    assert out.shape == (step, b, c, h, w)
    assert jnp.allclose(out, ref), "mismatch vs reference"
    print("KERNEL_OK")
</pallas_src>

<mosaic_0001>
module attributes {stable_mosaic.version = 11 : i64} {
  func.func @_ttfs_kernel(%arg0: i32, %arg1: i32, %arg2: memref<8x256xf32, #tpu.memory_space<vmem>>, %arg3: memref<1x8x256xf32, #tpu.memory_space<vmem>>) attributes {dimension_semantics = [#tpu.dimension_semantics<parallel>, #tpu.dimension_semantics<parallel>], iteration_bounds = array<i64: 1, 8>, scalar_prefetch = 0 : i64, scratch_operands = 0 : i64, tpu.core_type = #tpu.core_type<tc>, window_params = [{transform_indices = @transform_0, window_bounds = array<i64: 8, 256>}, {transform_indices = @transform_1, window_bounds = array<i64: 1, 8, 256>}]} {
    %c0 = arith.constant 0 : index
    %c0_0 = arith.constant 0 : index
    %0 = vector.load %arg2[%c0, %c0_0] : memref<8x256xf32, #tpu.memory_space<vmem>>, vector<8x256xf32>
    %cst = arith.constant 8.000000e+00 : f32
    %1 = vector.broadcast %cst : f32 to vector<8x256xf32>
    %2 = arith.mulf %0, %1 : vector<8x256xf32>
    %c1_i32 = arith.constant 1 : i32
    %3 = arith.muli %arg1, %c1_i32 : i32
    %c0_i32 = arith.constant 0 : i32
    %4 = arith.addi %3, %c0_i32 : i32
    %5 = arith.sitofp %4 : i32 to f32
    %cst_1 = arith.constant 8.000000e+00 : f32
    %6 = arith.subf %cst_1, %5 : f32
    %cst_2 = arith.constant 1.000000e+00 : f32
    %7 = arith.subf %6, %cst_2 : f32
    %cst_3 = arith.constant 1.000000e+00 : f32
    %8 = arith.addf %5, %cst_3 : f32
    %cst_4 = arith.constant 1.000000e+00 : f32
    %9 = arith.divf %cst_4, %8 : f32
    %10 = vector.broadcast %6 : f32 to vector<8x256xf32>
    %11 = arith.cmpf ole, %2, %10 : vector<8x256xf32>
    %12 = vector.broadcast %7 : f32 to vector<8x256xf32>
    %13 = arith.cmpf ogt, %2, %12 : vector<8x256xf32>
    %14 = arith.andi %11, %13 : vector<8x256xi1>
    %cst_5 = arith.constant 0.000000e+00 : f32
    %15 = vector.broadcast %9 : f32 to vector<8x256xf32>
    %16 = vector.broadcast %cst_5 : f32 to vector<8x256xf32>
    %17 = arith.select %14, %15, %16 : vector<8x256xi1>, vector<8x256xf32>
    %c0_6 = arith.constant 0 : index
    %c0_7 = arith.constant 0 : index
    %c0_8 = arith.constant 0 : index
    %18 = vector.load %arg3[%c0_6, %c0_7, %c0_8] : memref<1x8x256xf32, #tpu.memory_space<vmem>>, vector<1x8x256xf32>
    %19 = vector.shape_cast %18 : vector<1x8x256xf32> to vector<8x256xf32>
    %20 = vector.shape_cast %17 : vector<8x256xf32> to vector<1x8x256xf32>
    tpu.vector_store %arg3[%c0_6, %c0_7, %c0_8], %20 {strides = array<i32>} : memref<1x8x256xf32, #tpu.memory_space<vmem>>, vector<1x8x256xf32>,
    return
  }
  func.func @transform_0(%arg0: i32, %arg1: i32) -> (i32, i32) {
    %c0_i32 = arith.constant 0 : i32
    %c0_i32_0 = arith.constant 0 : i32
    return %arg0, %c0_i32 : i32, i32
  }
  func.func @transform_1(%arg0: i32, %arg1: i32) -> (i32, i32, i32) {
    %c0_i32 = arith.constant 0 : i32
    %c0_i32_0 = arith.constant 0 : i32
    return %arg1, %arg0, %c0_i32 : i32, i32, i32
  }
}

</mosaic_0001>

<bundles_post_ra>
// kernel: tpu_custom_call.1
= control target key start
LH: loop header
LB: loop body
LE: loop exit
PB: predicated region body
PF: predicated region fallthrough
CT: control target
= control target key end

     0   :  { %6 = vsyncpa [#allocation3], 0  ;;  %s597_s0 = inlined_call_operand.hbm [shape: f32[8,256], index: 0, kind: input, shape index: {}]   ;;  %s598_s1 = inlined_call_operand.hbm [shape: f32[8,8,256], index: 1, kind: output, shape index: {}]  }
   0x1   :  { %7 = vsyncpa [#allocation4], 0 }
   0x2   :  { %9 = vsyncpa [#allocation4 + $0x1], 0  ;;  %s451_s6 = smov 0   ;;  %s453_s7 = smov 0  }
   0x3   :  { %s455_s8 = smov 0   ;;  %s457_s9 = smov 0  }
   0x4   :  { %s459_s10 = smov 0   ;;  %s461_s11 = smov 0  }
   0x5 LB: > { %s243_s12 = sadd.s32 4294967295, %s437_s11   ;;  %s244_s13 = sadd.s32 4294967294, %s437_s11   ;;  %s437_s11 = sphi %s461_s11, %s15_s11   ;;  %s433_s10 = sphi %s459_s10, %s616_s10   ;;  %s429_s9 = sphi %s457_s9, %s615_s9   ;;  %s425_s8 = sphi %s455_s8, %s614_s8   ;;  %s421_s7 = sphi %s453_s7, %s613_s7   ;;  %s417_s6 = sphi %s451_s6, %s612_s6  }
   0x6   : > { %s24_s14 = sadd.s32 1, %s433_s10  ;;  %s62_s15 = sadd.s32 1, %s425_s8 }
   0x7   : > { %p25_p0 = scmp.ge.s32.totalorder %s24_s14, 8  ;;  %p72_p1 = scmp.ne.s32.totalorder %s425_s8, %s421_s7 }
   0x8   : > { %p73_p2 = scmp.eq.s32.totalorder %s243_s12, 7  ;;  %p78_p3 = scmp.ne.s32.totalorder %s421_s7, %s417_s6 }
   0x9   : > { %s618_s14 = smov (%p25_p0, %s24_s14), 0  ;;  %p79_p5 = scmp.eq.s32.totalorder %s244_s13, 7 }
   0xa   : > { %p491_p4 = por %p73_p2, %p72_p1  ;;  %s57_s17 = ssub.s32 %s433_s10, %s618_s14 }
   0xb   : > { %p245_p6 = scmp.ge.s32.totalorder %s437_s11, 1  ;;  %p60_p7 = scmp.eq.s32.totalorder %s57_s17, 0 }
   0xc   : > { %s603_s16 = scalar_select %p491_p4, 1, 0 }
   0xd   : > { %p498_p8 = por %p79_p5, %p78_p3  ;;  %p86_p9 = scmp.lt.s32.totalorder %s437_s11, 9 }
   0xe   : > { %s504_s19 = scalar_select %p60_p7, %s425_s8, %s62_s15  }
   0xf   : > { %s604_s18 = scalar_select %p498_p8, 1, 0 }
  0x10   : > { %p506_p10 = pnand %p245_p6, %p86_p9  ;;  %p510_p11 = scmp.eq.s32.totalorder %s243_s12, 0 }
  0x11   : > { %s439_s22 = smov [#allocation2]   ;;  %s327_s27 = scalar_lea.hbm %s597_s0, 256 }
  0x12   : > { %s605_s20 = scalar_select %p506_p10, 1, 0 }
  0x13   : > { %s606_s21 = scalar_select %p510_p11, 1, 0 }
  0x14   : > { %p265_p12 = pneg %p506_p10  ;;  %s102_s23 = sshll.u32 %s439_s22, 4  ;;  %s103_s23 = int_to_ptr.vmem [resolvable:$true] %s102_s23 }
  0x15   : > { %p328_p0 = scmp.ne.s32.totalorder %s597_s0, %s327_s27  ;;  %p334_p5 = scmp.lt.u32.totalorder %s327_s27, %s597_s0 }
  0x16   : > { %p518_p13 = pnand %p510_p11, %p265_p12 }
  0x18   : > { %p329_p1 = pneg %p518_p13 }
  0x1a   : > { %p330_p2 = pnand %p329_p1, %p328_p0 }
  0x1c   : > { %p331_p3 = pneg %p330_p2 }
  0x1e   : > { %p336_p6 = pnand %p334_p5, %p331_p3 }
  0x20   : > { %339 = shalt.err (!%p336_p6)
}
  0x21   : > { %s340_s3 = scalar_lea.vmem %s103_s23, 256  ;;  %p348_p8 = scmp.lt.s32.totalorder %s103_s23, %s103_s23 }
  0x22   : > { %p341_p7 = scmp.ne.s32.totalorder %s103_s23, %s340_s3  ;;  %p349_p4 = scmp.lt.s32.totalorder %s340_s3, %s340_s3 }
  0x24   : > { %p343_p9 = pnand %p341_p7, %p329_p1  ;;  %p350_p11 = por %p349_p4, %p348_p8 }
  0x26   : > { %p344_p12 = pneg %p343_p9 }
  0x28   : > { %p351_p10 = pnand %p350_p11, %p344_p12 }
  0x2a   : > { %354 = shalt.err (!%p351_p10)
}
  0x2b   : > { %268 = dma.hbm_to_vmem [thread:$0]  (!%p518_p13), %s597_s0, 256, %s103_s23, [#allocation3]  }
  0x2c   : > { %p608_p0 = scmp.ne.s32.totalorder %s605_s20, 0 }
  0x2d   : > { %s134_s12 = scvt.s32.f32 (!%p608_p0), %s429_s9  ;;  %p609_p2 = scmp.ne.s32.totalorder (!%p608_p0), %s606_s21, 0 }
  0x2e   : > { %115 = sbr.rel (%p608_p0) target bundleno = 134 (0x86), region = 24 }
  0x35   : > { %408 = dma.done.wait (%p609_p2), [#allocation3], 256  }
  0x36   : > { %410 = vsyncadd (%p609_p2), [#allocation3], 4294967040  ;;  %s137_s13 = sadd.f32 1.0, %s134_s12  ;;  %v130_v2 = vld [vmem:[#allocation2] sm:$0xff]  ;;  %s127_s20 = sand.u32 1, %s421_s7   ;;  %v131_v3 = vld [vmem:[#allocation2 + $0x8] sm:$0xff] }
  0x37   : > { %s135_s15 = ssub.f32 8.0, %s134_s12  ;;  %v132_v4 = vmul.f32 8.0, %v130_v2  ;;  %s249_s22 = sshll.u32 %s127_s20, 4  ;;  %v133_v5 = vmul.f32 8.0, %v131_v3 }
  0x38   : > { %v138_v0 = vstv %s137_s13  ;;  %s129_s21 = scalar_lea.vmem [#allocation5], %s249_s22  ;;  %s256_s24 = sshll.u32 %s429_s9, 8 }
  0x39   : > { %325 = vrcp.f32 %v138_v0  ;;  %s250_s17 = sadd.f32 -1.0, %s135_s15  ;;  %v141_v6 = vstv %s135_s15  ;;  %s171_s23 = sshll.u32 %s129_s21, 4  ;;  %s547_s23 = int_to_ptr.vmem [resolvable:$true] %s171_s23 }
  0x3a   : > { %vm142_vm0 = vcmp.le.f32.partialorder %v132_v4, %v141_v6  ;;  %vm143_vm2 = vcmp.le.f32.partialorder %v133_v5, %v141_v6  ;;  %s552_s28 = scalar_lea.hbm %s598_s1, %s256_s24  ;;  %s155_s29 = scalar_lea.sflag [#allocation4], %s127_s20 }
  0x3b   : > { %v144_v7 = vstv %s250_s17  ;;  %s355_s30 = scalar_lea.vmem %s547_s23, 256  ;;  %p610_p8 = scmp.ne.s32.totalorder %s603_s16, 0 }
  0x3c   : > { %vm145_vm1 = vcmp.gt.f32.partialorder %v132_v4, %v144_v7  ;;  %vm146_vm3 = vcmp.gt.f32.partialorder %v133_v5, %v144_v7  ;;  %p356_p4 = scmp.ne.s32.totalorder %s547_s23, %s355_s30  ;;  %s440_s9 = smov [#allocation5]  }
  0x3d   : > { %vm147_vm4 = vmand %vm142_vm0, %vm145_vm1  ;;  %s359_s2 = sshll.u32 %s440_s9, 4  ;;  %s360_s2 = int_to_ptr.vmem [resolvable:$false] %s359_s2 }
  0x3e   : > { %vm148_vm5 = vmand %vm143_vm2, %vm146_vm3  ;;  %p357_p10 = pnand %p356_p4, %p610_p8  ;;  %s361_s3 = scalar_lea.vmem %s360_s2, 512 }
  0x3f   : > { %p362_p13 = scmp.lt.s32.totalorder %s547_s23, %s360_s2  ;;  %p363_p1 = scmp.lt.s32.totalorder %s361_s3, %s355_s30 }
  0x40   : > { %p358_p11 = pneg %p357_p10 }
  0x41   : > { %p364_p3 = por %p363_p1, %p362_p13 }
  0x43   : > { %v326_v1 = vpop.eup %325  ;;  %p365_p5 = pnand %p364_p3, %p358_p11 }
  0x44   : > { %257 = vpush %v326_v1 }
  0x75   : > { %s258_s25 = spop %257 }
  0x76   : > { %v149_v8 = vstv %s258_s25 }
  0x77   : > { %v150_v9 = vsel %vm147_vm4, %v149_v8, 0.0  ;;  %v151_v10 = vsel %vm148_vm5, %v149_v8, 0.0 }
  0x78   : > { %152 = vst [vmem:[%s129_s21] sm:$0xff] %v150_v9  ;;  %153 = vst [vmem:[%s129_s21 + $0x8] sm:$0xff] %v151_v10 }
  0x79   : > { %368 = shalt.err (!%p365_p5)
}
  0x7a   : > { %s369_s4 = scalar_lea.hbm %s552_s28, 256  ;;  %s373_s13 = scalar_lea.hbm %s598_s1, 2048 }
  0x7b   : > { %p370_p6 = scmp.ne.s32.totalorder %s552_s28, %s369_s4  ;;  %p374_p12 = scmp.lt.u32.totalorder %s552_s28, %s598_s1 }
  0x7c   : > { %p375_p0 = scmp.lt.u32.totalorder %s373_s13, %s369_s4  ;;  %p377_p4 = scmp.lt.u32.totalorder %s369_s4, %s552_s28 }
  0x7d   : > { %p371_p7 = pnand %p370_p6, %p610_p8 }
  0x7e   : > { %p376_p2 = por %p375_p0, %p374_p12 }
  0x7f   : > { %p372_p9 = pneg %p371_p7 }
  0x80   : > { %p378_p10 = por %p377_p4, %p376_p2 }
  0x82   : > { %p379_p11 = pnand %p378_p10, %p372_p9 }
  0x84   : > { %382 = shalt.err (!%p379_p11)
}
  0x85   : > { %263 = dma.vmem_to_hbm [thread:$0]  (%p610_p8), %s547_s23, 256, %s552_s28, %s155_s29  }
  0x86 PF: > { %p275_p13 = scmp.ge.s32.totalorder %s437_s11, 2  ;;  %s183_s20 = sand.u32 1, %s417_s6  }
  0x87   : > { %p611_p1 = scmp.ne.s32.totalorder %s604_s18, 0  ;;  %s184_s22 = scalar_lea.sflag [#allocation4], %s183_s20 }
  0x89   : > { %p270_p3 = pnand %p275_p13, %p611_p1 }
  0x8b   : > { %412 = dma.done.wait (!%p270_p3), %s184_s22, 256  }
  0x8c   : > { %414 = vsyncadd (!%p270_p3), %s184_s22, 4294967040  ;;  %s15_s11 = sadd.s32 1, %s437_s11   ;;  %s612_s6 = smov %s421_s7 }
  0x8d   : > { %p12_p5 = scmp.ge.s32.totalorder %s15_s11, 10   ;;  %s613_s7 = smov %s425_s8 }
  0x8e   : > { %s614_s8 = smov %s504_s19  ;;  %s615_s9 = smov %s433_s10 }
  0x8f   : > { %s616_s10 = smov %s618_s14  ;;  %14 = sbr.rel (!%p12_p5) target bundleno = 5 (0x5), region = 62 }
  0x96   :  { %189 = vsyncpa [#allocation3], 1 }
  0x97   :  { %191 = vsyncpa [#allocation3 + $0x1], 1 }
  0x98   :  { %192 = vsyncpa [#allocation4], 1 }
  0x99   :  { %194 = vsyncpa [#allocation4 + $0x1], 1 }

</bundles_post_ra>
